<compile_context>
chip_gen: v6e
topology: v6e:2x2x1
jax: 0.10.0
libtpu: 0.0.40
codegen_flags: <defaults>
</compile_context>

<pallas_src>
import functools

import jax
import jax.numpy as jnp
from jax.experimental import pallas as pl
from jax.experimental.pallas import tpu as pltpu


def _round_up(n, m):
    return ((n + m - 1) // m) * m


def _choose_tm(M, target):
    """Pick the row-tile TM.

    Prefer the largest TM that divides M exactly (no M padding, no
    post-kernel row-slice copy), is a multiple of 8 (sublane-legal) and is
    <= target; accept it when it is >= min(256, target) (MXU-filling, or the
    whole problem is tiny).  Otherwise fall back to a 128-multiple TM with M
    padded up (pad rows are zero and sliced off afterwards).
    """
    cap = min(M, max(8, target))
    best = 0
    for d in range(8, cap + 1, 8):
        if M % d == 0:
            best = d
    if best and best >= min(256, cap):
        return best, M                       # divides M exactly -> no padding
    tm = min(max(128, (target // 128) * 128), _round_up(M, 128))
    return tm, _round_up(M, tm)


def _matmul_kernel(p_ref, w_ref, o_ref):
    acc = jnp.dot(p_ref[...], w_ref[...], preferred_element_type=jnp.float32)
    o_ref[...] = acc.astype(o_ref.dtype)


def _matmul_bias_kernel(p_ref, w_ref, b_ref, o_ref):
    acc = jnp.dot(p_ref[...], w_ref[...], preferred_element_type=jnp.float32)
    acc = acc + b_ref[...].astype(jnp.float32)
    o_ref[...] = acc.astype(o_ref.dtype)


def _extract_patches(x, patch_size, ckk_pad=None):
    """x: (B, C, T, H, W) -> (B*T*K, CKK[_pad]).

    Patch vector flattened in (c, i, j) order (matches the PyTorch Conv2d
    weight flattening); K ordered as hp*Wp + wp (matches conv .flatten(2)).
    The trailing zero-pad to ckk_pad keeps the LHS tile lane-aligned and is
    matched by zero rows in the weight matrix."""
    B, C, T, H, W = x.shape
    p = patch_size
    Hp, Wp = H // p, W // p
    x = jnp.transpose(x, (0, 2, 1, 3, 4))            # (B, T, C, H, W)
    x = x.reshape(B * T, C, Hp, p, Wp, p)
    x = jnp.transpose(x, (0, 2, 4, 1, 3, 5))         # (BT, Hp, Wp, C, p, p)
    patches = x.reshape(B * T * Hp * Wp, C * p * p)
    ckk = C * p * p
    if ckk_pad is not None and ckk_pad != ckk:
        patches = jnp.pad(patches, ((0, 0), (0, ckk_pad - ckk)))
    return patches


@functools.partial(
    jax.jit,
    static_argnames=("patch_size", "block_m", "compute_dtype", "out_dtype"))
def patch_embed_forward(x, weight, bias=None, *, patch_size, block_m=1024,
                        compute_dtype=jnp.bfloat16, out_dtype=None):
    """Equivalent of PatchEmbed.forward.

    x:      (B, C, T, H, W)        float32
    weight: (embed_dim, C, p, p)   float32 (PyTorch Conv2d weight layout)
    bias:   (embed_dim,) or None   (None == surgery=False, bias-free conv)
    out_dtype: dtype of the returned activations; None -> compute_dtype
               (bf16, halves output HBM traffic).  Pass jnp.float32 for f32.
    returns (B, T, K, embed_dim) with K = (H/p)*(W/p)
    """
    if out_dtype is None:
        out_dtype = compute_dtype

    B, C, T, H, W = x.shape
    p = patch_size
    assert H % p == 0 and W % p == 0
    Hp, Wp = H // p, W // p
    K = Hp * Wp
    E = weight.shape[0]
    CKK = C * p * p
    M = B * T * K

    # Lane-aligned contraction and output dims (zero MACs / sliced off).
    CKK_pad = _round_up(CKK, 128)
    E_pad = _round_up(E, 128)
    TM, M_pad = _choose_tm(M, block_m)

    cbytes = jnp.dtype(compute_dtype).itemsize
    obytes = jnp.dtype(out_dtype).itemsize

    # Cast to the compute dtype *before* the extraction so the whole
    # cast+transpose+pad producer is one fusion XLA can pull into the Pallas
    # input fetch (allow_input_fusion below), avoiding an (M, CKK) HBM
    # round trip.
    patches = _extract_patches(x.astype(compute_dtype), p, CKK_pad)
    if M_pad != M:
        patches = jnp.pad(patches, ((0, M_pad - M), (0, 0)))

    w_mat = weight.reshape(E, CKK).T.astype(compute_dtype)      # (CKK, E)
    w_mat = jnp.pad(w_mat, ((0, CKK_pad - CKK), (0, E_pad - E)))

    in_specs = [
        pl.BlockSpec((TM, CKK_pad), lambda i: (i, 0)),      # streamed LHS tiles
        pl.BlockSpec((CKK_pad, E_pad), lambda i: (0, 0)),   # resident weight
    ]
    operands = [patches, w_mat]
    if bias is not None:
        b_mat = jnp.pad(bias.astype(jnp.float32).reshape(1, E),
                        ((0, 0), (0, E_pad - E)))
        in_specs.append(pl.BlockSpec((1, E_pad), lambda i: (0, 0)))
        operands.append(b_mat)
        kernel = _matmul_bias_kernel
    else:
        kernel = _matmul_kernel

    # Per-step VMEM footprint: double-buffered LHS + output tiles, resident
    # (double-buffer-counted to be safe) weight, small bias.
    footprint = (2 * TM * CKK_pad * cbytes
                 + 2 * TM * E_pad * obytes
                 + 2 * CKK_pad * E_pad * cbytes
                 + (2 * E_pad * 4 if bias is not None else 0))
    vmem_limit = int(min(max(footprint + (8 << 20), 32 << 20), 100 << 20))

    bytes_accessed = (M_pad * CKK_pad * cbytes
                      + CKK_pad * E_pad * cbytes
                      + M_pad * E_pad * obytes
                      + (E_pad * 4 if bias is not None else 0))
    cost = pl.CostEstimate(flops=2 * M_pad * CKK_pad * E_pad,
                           transcendentals=0,
                           bytes_accessed=bytes_accessed)

    compiler_params = pltpu.CompilerParams(
        dimension_semantics=("parallel",),
        # Allow XLA to fuse the patch-extraction producer (operand 0) into
        # the Pallas input fetch instead of materializing it in HBM.
        allow_input_fusion=[True] + [False] * (len(operands) - 1),
        vmem_limit_bytes=vmem_limit,
    )

    out = pl.pallas_call(
        kernel,
        out_shape=jax.ShapeDtypeStruct((M_pad, E_pad), out_dtype),
        grid_spec=pltpu.PrefetchScalarGridSpec(
            num_scalar_prefetch=0,
            grid=(M_pad // TM,),
            in_specs=in_specs,
            out_specs=pl.BlockSpec((TM, E_pad), lambda i: (i, 0)),
        ),
        compiler_params=compiler_params,
        cost_estimate=cost,
    )(*operands)

    if M_pad != M or E_pad != E:          # skipped when dims already aligned
        out = out[:M, :E]
    # '(b t) c k -> b t k c' (the matmul already yields (bt*k, c)).
    return out.reshape(B, T, K, E)


def reference_forward(x, weight, bias, patch_size, dtype=jnp.float32):
    """Pure-JAX reference (conv == patch matmul) with f32 accumulation."""
    B, C, T, H, W = x.shape
    p = patch_size
    E = weight.shape[0]
    patches = _extract_patches(x, p).astype(dtype)               # (M, C*p*p)
    w_mat = weight.reshape(E, C * p * p).T.astype(dtype)
    out = jnp.dot(patches, w_mat, preferred_element_type=jnp.float32)
    if bias is not None:
        out = out + bias[None, :].astype(jnp.float32)
    K = (H // p) * (W // p)
    return out.reshape(B, T, K, E).astype(jnp.float32)


if __name__ == "__main__":
    # Small, self-consistent shapes: img_size=32, patch_size=8, in_chans=3,
    # embed_dim=64 (exercises the E->128 and CKK 192->256 lane pads),
    # num_frames(T)=2, batch=2  =>  K=16, M=64, CKK=192.
    B, C, T, H, W = 2, 3, 2, 32, 32
    patch_size = 8
    embed_dim = 64
    K = (H // patch_size) * (W // patch_size)

    key = jax.random.PRNGKey(0)
    kx, kw, kb = jax.random.split(key, 3)
    x = jax.random.normal(kx, (B, C, T, H, W), dtype=jnp.float32)
    weight = (jax.random.normal(kw, (embed_dim, C, patch_size, patch_size),
                                dtype=jnp.float32) * 0.02)
    bias = (jax.random.normal(kb, (embed_dim,), dtype=jnp.float32) * 0.02)

    ref16 = reference_forward(x, weight, None, patch_size, dtype=jnp.bfloat16)
    ref32 = reference_forward(x, weight, None, patch_size, dtype=jnp.float32)

    # surgery=False (bias-free conv), default bf16 activations out.
    out = patch_embed_forward(x, weight, None, patch_size=patch_size)
    out = jax.block_until_ready(out)
    assert out.shape == (B, T, K, embed_dim)
    assert out.dtype == jnp.bfloat16
    assert jnp.allclose(out.astype(jnp.float32), ref16, atol=2e-2, rtol=2e-2), \
        "mismatch vs bf16-input reference (bf16 out)"
    assert jnp.allclose(out.astype(jnp.float32), ref32, atol=6e-2, rtol=6e-2), \
        "mismatch vs f32 reference (bf16 out)"

    # f32-output path (matches the module's default activation dtype).
    out32 = patch_embed_forward(x, weight, None, patch_size=patch_size,
                                out_dtype=jnp.float32)
    out32 = jax.block_until_ready(out32)
    assert out32.dtype == jnp.float32
    assert jnp.allclose(out32, ref16, atol=1e-3, rtol=1e-3), \
        "mismatch vs bf16-input reference (f32 out)"

    # surgery=True (conv with bias); small block_m exercises a multi-step
    # streamed grid (TM=32 divides M=64 -> 2 grid steps, no padding of M).
    out_b = patch_embed_forward(x, weight, bias, patch_size=patch_size,
                                block_m=32, out_dtype=jnp.float32)
    out_b = jax.block_until_ready(out_b)
    ref_b = reference_forward(x, weight, bias, patch_size, dtype=jnp.bfloat16)
    assert out_b.shape == (B, T, K, embed_dim)
    assert jnp.allclose(out_b, ref_b, atol=1e-3, rtol=1e-3), \
        "mismatch vs bf16-input reference (bias path)"

    print("KERNEL_OK")
</pallas_src>

<mosaic_0001>
module attributes {stable_mosaic.version = 11 : i64} {
  func.func @_matmul_kernel(%arg0: i32, %arg1: memref<64x256xbf16, #tpu.memory_space<vmem>>, %arg2: memref<256x128xbf16, #tpu.memory_space<vmem>>, %arg3: memref<64x128xbf16, #tpu.memory_space<vmem>>) attributes {dimension_semantics = [#tpu.dimension_semantics<parallel>], iteration_bounds = array<i64: 1>, scalar_prefetch = 0 : i64, scratch_operands = 0 : i64, tpu.core_type = #tpu.core_type<tc>, window_params = [{transform_indices = @transform_0, window_bounds = array<i64: 64, 256>}, {pipeline_mode = #tpu.pipeline_mode<synchronous>, transform_indices = @transform_1, window_bounds = array<i64: 256, 128>}, {transform_indices = @transform_2, window_bounds = array<i64: 64, 128>}]} {
    %c0 = arith.constant 0 : index
    %c0_0 = arith.constant 0 : index
    %0 = vector.load %arg1[%c0, %c0_0] : memref<64x256xbf16, #tpu.memory_space<vmem>>, vector<64x256xbf16>
    %c0_1 = arith.constant 0 : index
    %c0_2 = arith.constant 0 : index
    %1 = vector.load %arg2[%c0_1, %c0_2] : memref<256x128xbf16, #tpu.memory_space<vmem>>, vector<256x128xbf16>
    %cst = arith.constant dense<0.000000e+00> : vector<64x128xf32>
    %2 = tpu.matmul %0, %1, %cst {dimension_numbers = #tpu.dot_dimension_numbers<[1], [0], [0], [1], [0, 0, 1, 1], [], []>} : vector<64x256xbf16>, vector<256x128xbf16>, vector<64x128xf32> -> vector<64x128xf32>
    %3 = arith.truncf %2 : vector<64x128xf32> to vector<64x128xbf16>
    %c0_3 = arith.constant 0 : index
    %c0_4 = arith.constant 0 : index
    %4 = vector.load %arg3[%c0_3, %c0_4] : memref<64x128xbf16, #tpu.memory_space<vmem>>, vector<64x128xbf16>
    tpu.vector_store %arg3[%c0_3, %c0_4], %3 {strides = array<i32>} : memref<64x128xbf16, #tpu.memory_space<vmem>>, vector<64x128xbf16>,
    return
  }
  func.func @transform_0(%arg0: i32) -> (i32, i32) {
    %c0_i32 = arith.constant 0 : i32
    %c0_i32_0 = arith.constant 0 : i32
    return %arg0, %c0_i32 : i32, i32
  }
  func.func @transform_1(%arg0: i32) -> (i32, i32) {
    %c0_i32 = arith.constant 0 : i32
    %c0_i32_0 = arith.constant 0 : i32
    %c0_i32_1 = arith.constant 0 : i32
    return %c0_i32, %c0_i32_0 : i32, i32
  }
  func.func @transform_2(%arg0: i32) -> (i32, i32) {
    %c0_i32 = arith.constant 0 : i32
    %c0_i32_0 = arith.constant 0 : i32
    return %arg0, %c0_i32 : i32, i32
  }
}

</mosaic_0001>

<bundles_post_ra>
// kernel: patch_embed_forward.2
= control target key start
LH: loop header
LB: loop body
LE: loop exit
PB: predicated region body
PF: predicated region fallthrough
CT: control target
= control target key end

     0   :  { %s941_s0 = inlined_call_operand.vmem [shape: bf16[256,128], index: 0, kind: input, shape index: {}]   ;;  %s942_s1 = inlined_call_operand.vmem [shape: bf16[64,192], index: 1, kind: input, shape index: {}]   ;;  %s943_s2 = inlined_call_operand.<no memory space> [shape: bf16[], index: 2, kind: input, shape index: {}]   ;;  %s944_s3 = inlined_call_operand.hbm [shape: bf16[64,128], index: 3, kind: output, shape index: {}]  }
   0x1   :  { %v8_v0 = vstv %s943_s2 }
   0x2   :  { %v825_v1 = vunpack.i.l.bf16 %v8_v0 }
   0x3   :  { %v748_v2 = vld [vmem:[%s941_s0 + $0x78] sm:$0xff]   ;;  %v750_v4 = vld [vmem:[%s941_s0 + $0x70] sm:$0xff]   ;;  %v43_v6 = vlaneseq  ;;  %v752_v7 = vld [vmem:[%s941_s0 + $0x68] sm:$0xff]   ;;  %v798_v38 = vmov 0.0  }
   0x4   :  { %v749_v3 = vld [vmem:[%s941_s0 + $0x38] sm:$0xff]   ;;  %688 = vmatprep.subr.bf16.mxu0 %v748_v2  ;;  %728 = vmatprep.subr.bf16.mxu1 %v748_v2  ;;  %v751_v5 = vld [vmem:[%s941_s0 + $0x30] sm:$0xff]   ;;  %v753_v8 = vld [vmem:[%s941_s0 + $0x28] sm:$0xff]  }
   0x5   :  { %689 = vmatpush3.bf16.msra.mxu0 %v749_v3  ;;  %736 = vmatpush3.bf16.msra.mxu1 %v749_v3  ;;  %v44_v9 = vand.u32 127, %v43_v6  ;;  %v754_v10 = vld [vmem:[%s941_s0 + $0x60] sm:$0xff]   ;;  %v756_v13 = vld [vmem:[%s941_s0 + $0x58] sm:$0xff]   ;;  %v758_v15 = vld [vmem:[%s941_s0 + $0x50] sm:$0xff]  }
   0x6   :  { %690 = vmatprep.subr.bf16.mxu0 %v750_v4  ;;  %729 = vmatprep.subr.bf16.mxu1 %v750_v4  ;;  %v755_v11 = vld [vmem:[%s941_s0 + $0x20] sm:$0xff]   ;;  %v757_v14 = vld [vmem:[%s941_s0 + $0x18] sm:$0xff]   ;;  %v611_v18 = vld [vmem:[%s942_s1 + $0x8] sm:$0xf] }
   0x7   :  { %v851_v12 = vadd.s32 128, %v44_v9  ;;  %v18_v16 = vld [vmem:[%s942_s1] sm:$0xf]  ;;  %v610_v17 = vld [vmem:[%s942_s1 + $0x4] ss:$8 sps:$4 sm:$0xff]   ;;  %v759_v19 = vld [vmem:[%s941_s0 + $0x10] sm:$0xff]  }
   0x8   :  { %29 = vst [vmem:[#allocation9] sm:$0xf] %v18_v16  ;;  %v41_v20 = vunpack.c.l.bf16 %v610_v17  ;;  %66 = vst [vmem:[#allocation9 + $0x8] sm:$0xf] %v611_v18  ;;  %v78_v21 = vunpack.c.h.bf16 %v610_v17  ;;  %v617_v22 = vld [vmem:[%s942_s1 + $0x20] sm:$0xf] }
   0x9   :  { %691 = vmatpush3.bf16.msra.mxu0 %v751_v5  ;;  %737 = vmatpush3.bf16.msra.mxu1 %v751_v5  ;;  %vm46_vm0 = vcmp.lt.s32.totalorder %v851_v12, 192  ;;  %v618_v23 = vld [vmem:[%s942_s1 + $0x24] ss:$8 sps:$4 sm:$0xff]   ;;  %v619_v24 = vld [vmem:[%s942_s1 + $0x28] sm:$0xf] }
   0xa   :  { %692 = vmatprep.subr.bf16.mxu0 %v752_v7  ;;  %730 = vmatprep.subr.bf16.mxu1 %v752_v7  ;;  %177 = vst [vmem:[#allocation9 + $0x20] sm:$0xf] %v617_v22  ;;  %v189_v25 = vunpack.c.l.bf16 %v618_v23  ;;  %214 = vst [vmem:[#allocation9 + $0x28] sm:$0xf] %v619_v24  ;;  %v226_v26 = vunpack.c.h.bf16 %v618_v23  ;;  %v613_v27 = vld [vmem:[%s942_s1 + $0x10] sm:$0xf]  ;;  %v47_v30 = vsel %vm46_vm0, %v41_v20, %v825_v1 }
   0xb   :  { %v614_v28 = vld [vmem:[%s942_s1 + $0x14] ss:$8 sps:$4 sm:$0xff]   ;;  %v615_v29 = vld [vmem:[%s942_s1 + $0x18] sm:$0xf]  ;;  %v84_v31 = vsel %vm46_vm0, %v78_v21, %v825_v1  ;;  %103 = vst [vmem:[#allocation9 + $0x10] sm:$0xf] %v613_v27  ;;  %v49_v39 = vpack.c.bf16 %v798_v38, %v47_v30 }
   0xc   :  { %v115_v32 = vunpack.c.l.bf16 %v614_v28  ;;  %140 = vst [vmem:[#allocation9 + $0x18] sm:$0xf] %v615_v29  ;;  %v152_v33 = vunpack.c.h.bf16 %v614_v28  ;;  %v621_v34 = vld [vmem:[%s942_s1 + $0x30] sm:$0xf]  ;;  %v622_v35 = vld [vmem:[%s942_s1 + $0x34] ss:$8 sps:$4 sm:$0xff]   ;;  %v86_v40 = vpack.c.bf16 %v798_v38, %v84_v31  ;;  %v195_v41 = vsel %vm46_vm0, %v189_v25, %v825_v1 }
   0xd   :  { %693 = vmatpush3.bf16.msra.mxu0 %v753_v8  ;;  %738 = vmatpush3.bf16.msra.mxu1 %v753_v8  ;;  %v623_v36 = vld [vmem:[%s942_s1 + $0x38] sm:$0xf]  ;;  %v760_v37 = vld [vmem:[%s941_s0 + $0x48] sm:$0xff]   ;;  %251 = vst [vmem:[#allocation9 + $0x30] sm:$0xf] %v621_v34  ;;  %v263_v42 = vunpack.c.l.bf16 %v622_v35 }
   0xe   :  { %694 = vmatprep.subr.bf16.mxu0 %v754_v10  ;;  %731 = vmatprep.subr.bf16.mxu1 %v754_v10  ;;  %288 = vst [vmem:[#allocation9 + $0x38] sm:$0xf] %v623_v36 }
  0x11   :  { %695 = vmatpush3.bf16.msra.mxu0 %v755_v11  ;;  %739 = vmatpush3.bf16.msra.mxu1 %v755_v11 }
  0x12   :  { %696 = vmatprep.subr.bf16.mxu0 %v756_v13  ;;  %732 = vmatprep.subr.bf16.mxu1 %v756_v13 }
  0x15   :  { %697 = vmatpush3.bf16.msra.mxu0 %v757_v14  ;;  %740 = vmatpush3.bf16.msra.mxu1 %v757_v14 }
  0x16   :  { %698 = vmatprep.subr.bf16.mxu0 %v758_v15  ;;  %733 = vmatprep.subr.bf16.mxu1 %v758_v15 }
  0x17   :  { %13 = vsyncpa [#allocation8], 0  ;;  %v197_v43 = vpack.c.bf16 %v798_v38, %v195_v41  ;;  %v232_v44 = vsel %vm46_vm0, %v226_v26, %v825_v1  ;;  %v121_v45 = vsel %vm46_vm0, %v115_v32, %v825_v1  ;;  %v158_v46 = vsel %vm46_vm0, %v152_v33, %v825_v1  ;;  %52 = vst [vmem:[#allocation9 + $0x4] sm:$0xf] %v49_v39  ;;  %v761_v51 = vld [vmem:[%s941_s0 + $0x8] sm:$0xff]   ;;  %v762_v54 = vld [vmem:[%s941_s0 + $0x40] sm:$0xff]  }
  0x18   :  { %89 = vst [vmem:[#allocation9 + $0xc] sm:$0xf] %v86_v40  ;;  %v234_v47 = vpack.c.bf16 %v798_v38, %v232_v44  ;;  %v123_v48 = vpack.c.bf16 %v798_v38, %v121_v45  ;;  %v160_v49 = vpack.c.bf16 %v798_v38, %v158_v46  ;;  %v269_v50 = vsel %vm46_vm0, %v263_v42, %v825_v1  ;;  %v763_v57 = vld [vmem:[%s941_s0] sm:$0xff]   ;;  %v774_v0 = vld [vmem:[#allocation9 + $0x10] ss:$8 sps:$4 sm:$0xff]   ;;  %s799_s0 = smov [#allocation7]  }
  0x19   :  { %699 = vmatpush3.bf16.msra.mxu0 %v759_v19  ;;  %741 = vmatpush3.bf16.msra.mxu1 %v759_v19  ;;  %200 = vst [vmem:[#allocation9 + $0x24] sm:$0xf] %v197_v43  ;;  %v271_v52 = vpack.c.bf16 %v798_v38, %v269_v50  ;;  %v300_v53 = vunpack.c.h.bf16 %v622_v35  ;;  %v764_v58 = vld [vmem:[#allocation9] ss:$8 sps:$4 sm:$0xff]   ;;  %s599_s13 = sshll.u32 %s799_s0, 4  ;;  %s600_s13 = int_to_ptr.vmem [resolvable:$true] %s599_s13 }
  0x1a   :  { %700 = vmatprep.subr.bf16.mxu0 %v760_v37  ;;  %734 = vmatprep.subr.bf16.mxu1 %v760_v37  ;;  %237 = vst [vmem:[#allocation9 + $0x2c] sm:$0xf] %v234_v47  ;;  %126 = vst [vmem:[#allocation9 + $0x14] sm:$0xf] %v123_v48  ;;  %v767_v60 = vld [vmem:[#allocation9 + $0x20] ss:$8 sps:$4 sm:$0xff]   ;;  %p781_p1 = scmp.lt.s32.totalorder %s600_s13, %s600_s13 }
  0x1b   :  { %163 = vst [vmem:[#allocation9 + $0x1c] sm:$0xf] %v160_v49  ;;  %274 = vst [vmem:[#allocation9 + $0x34] sm:$0xf] %v271_v52  ;;  %v306_v55 = vsel %vm46_vm0, %v300_v53, %v825_v1  ;;  %v775_v1 = vld [vmem:[#allocation9 + $0x30] ss:$8 sps:$4 sm:$0xff]  }
  0x1c   :  { %v308_v56 = vpack.c.bf16 %v798_v38, %v306_v55  ;;  %s776_s14 = scalar_lea.vmem %s600_s13, 512 }
  0x1d   :  { %701 = vmatpush3.bf16.msra.mxu0 %v761_v51  ;;  %742 = vmatpush3.bf16.msra.mxu1 %v761_v51  ;;  %p777_p0 = scmp.ne.s32.totalorder %s600_s13, %s776_s14  ;;  %p782_p2 = scmp.lt.s32.totalorder %s776_s14, %s776_s14 }
  0x1e   :  { %702 = vmatprep.subr.bf16.mxu0 %v762_v54  ;;  %735 = vmatprep.subr.bf16.mxu1 %v762_v54  ;;  %311 = vst [vmem:[#allocation9 + $0x3c] sm:$0xf] %v308_v56 }
  0x1f   :  { %v766_v59 = vld [vmem:[#allocation9 + $0x4] ss:$8 sps:$4 sm:$0xff]   ;;  %p783_p3 = por %p782_p2, %p781_p1 }
  0x20   :  { %521 = vmatprep.mubr.bf16.mxu0 %v766_v59 }
  0x21   :  { %703 = vmatpush3.bf16.msra.mxu0 %v763_v57  ;;  %743 = vmatpush3.bf16.msra.mxu1 %v763_v57  ;;  %v769_v61 = vld [vmem:[#allocation9 + $0x24] ss:$8 sps:$4 sm:$0xff]   ;;  %p784_p4 = pnand %p783_p3, %p777_p0 }
  0x22   :  { %v770_v62 = vld [vmem:[#allocation9 + $0x14] ss:$8 sps:$4 sm:$0xff]   ;;  %537 = vmatprep.mubr.bf16.mxu1 %v769_v61 }
  0x24   :  { %522 = vmatmul.mubr.bf16.vlgmr.msra.gmra.mxu0 %v764_v58  ;;  %538 = vmatmul.mubr.bf16.vlgmr.msra.gmra.mxu1 %v767_v60 }
  0x25   :  { %529 = vmatprep.mubr.bf16.mxu0 %v770_v62  ;;  %v772_v63 = vld [vmem:[#allocation9 + $0x34] ss:$8 sps:$4 sm:$0xff]  }
  0x26   :  { %545 = vmatprep.mubr.bf16.mxu1 %v772_v63 }
  0x2c   :  { %530 = vmatmul.mubr.bf16.gmra.mxu0 %v774_v0  ;;  %546 = vmatmul.mubr.bf16.gmra.mxu1 %v775_v1 }
  0xe4   :  { %v704_v2 = vpop.f32.mrf.mxu0  ;;  %v716_v3 = vpop.f32.mrf.mxu1 }
  0xe6   :  { %v705_v4 = vpop.f32.mrf.mxu0  ;;  %v717_v5 = vpop.f32.mrf.mxu1 }
  0xe7   :  { %v706_v10 = vadd.f32 %v705_v4, %v704_v2  ;;  %v718_v11 = vadd.f32 %v717_v5, %v716_v3 }
  0xe8   :  { %v707_v6 = vpop.f32.mrf.mxu0  ;;  %v719_v7 = vpop.f32.mrf.mxu1 }
  0xea   :  { %v708_v8 = vpop.f32.mrf.mxu0  ;;  %v720_v9 = vpop.f32.mrf.mxu1 }
  0xeb   :  { %v709_v12 = vadd.f32 %v708_v8, %v707_v6  ;;  %v721_v13 = vadd.f32 %v720_v9, %v719_v7 }
  0xec   :  { %v710_v14 = vpop.f32.mrf.mxu0  ;;  %v722_v15 = vpop.f32.mrf.mxu1 }
  0xed   :  { %v668_v16 = vpack.c.bf16 %v709_v12, %v706_v10  ;;  %v678_v17 = vpack.c.bf16 %v721_v13, %v718_v11 }
  0xee   :  { %v711_v18 = vpop.f32.mrf.mxu0  ;;  %v723_v19 = vpop.f32.mrf.mxu1 }
  0xef   :  { %669 = vst [vmem:[#allocation7] sm:$0xff] %v668_v16   ;;  %686 = vst [vmem:[#allocation7 + $0x10] sm:$0xff] %v678_v17   ;;  %v712_v24 = vadd.f32 %v711_v18, %v710_v14  ;;  %v724_v25 = vadd.f32 %v723_v19, %v722_v15 }
  0xf0   :  { %v713_v20 = vpop.f32.mrf.mxu0  ;;  %v725_v21 = vpop.f32.mrf.mxu1 }
  0xf2   :  { %v714_v22 = vpop.f32.mrf.mxu0  ;;  %v726_v23 = vpop.f32.mrf.mxu1 }
  0xf3   :  { %v715_v26 = vadd.f32 %v714_v22, %v713_v20  ;;  %v727_v27 = vadd.f32 %v726_v23, %v725_v21 }
  0xf5   :  { %v673_v28 = vpack.c.bf16 %v715_v26, %v712_v24  ;;  %v683_v29 = vpack.c.bf16 %v727_v27, %v724_v25 }
  0xf7   :  { %685 = vst [vmem:[#allocation7 + $0x8] sm:$0xff] %v673_v28   ;;  %687 = vst [vmem:[#allocation7 + $0x18] sm:$0xff] %v683_v29  }
  0xf8   :  { %787 = shalt.err (!%p784_p4)
}
  0xf9   :  { %s800_s15 = smov 64   ;;  %s801_s16 = smov 4  }
  0xfa   :  { %605 = dma.vmem_to_hbm [thread:$0]  %s600_s13, 512, %s944_s3, [#allocation8], %s800_s15, %s800_s15, %s801_s16  }
  0xfb   :  { %796 = dma.done.wait [#allocation8], 512  }
  0xfc   :  { %797 = vsyncadd [#allocation8], 4294966784 }
  0xfd   :  { %609 = vsyncpa [#allocation8], 1 }

</bundles_post_ra>
